<compile_context>
chip_gen: v6e
topology: v6e:2x2x1
jax: 0.10.0
libtpu: 0.0.40
codegen_flags: <defaults>
</compile_context>

<pallas_src>
import functools

import jax
import jax.numpy as jnp
from jax.experimental import pallas as pl
from jax.experimental.pallas import tpu as pltpu

LANE = 128          # TPU lane width (last dim)
SUBLANE = 8         # f32 sublane width
BF16_SUBLANE = 16   # bf16 sublane packing
_MAX_TILE_B = 1024  # cap on batch-lane tile


def _round_up(n, m):
    return ((n + m - 1) // m) * m


def _cdiv(a, b):
    return -(-a // b)


def _choose_tiling(batch):
    """Return (Bp, tile_b, n_tiles); tile_b is a multiple of 128 dividing Bp."""
    Bp = _round_up(max(batch, 1), LANE)
    if Bp <= LANE:
        tile = Bp
    else:
        # >=2 tiles so dimension_semantics=("parallel", ...) can use both
        # TensorCores on v7x; cap the tile so VMEM stays tiny on every chip.
        n = max(2, _cdiv(Bp, _MAX_TILE_B))
        tile = _round_up(_cdiv(Bp, n), LANE)
        Bp = _round_up(Bp, tile)
    return Bp, tile, Bp // tile


# ----------------------------------------------------------------------------
# Kernel: one batch-lane tile, one timestep (grid = (batch_tiles, T))
# ----------------------------------------------------------------------------
def _agent_rnn_kernel(x_ref, h0_ref, w1_ref, b1_ref, wih_ref, bih_ref,
                      whh_ref, bhh_ref, w2_ref, b2_ref, q_ref, hout_ref):
    """fc1 + ReLU + GRUCell + fc2 in batch-on-lanes layout.

    bf16 MXU operands / f32 accumulation; f32 VPU/EUP elementwise.  Gate
    slicing is on sublanes (rows).  The recurrent state is carried across the
    (innermost) timestep grid axis in the VMEM-resident `hout_ref` block.
    """
    t = pl.program_id(1)

    @pl.when(t == 0)
    def _():
        hout_ref[...] = h0_ref[...]

    h = hout_ref[...]                                           # (Hp, TB) f32

    # fc1 + ReLU:  hid^T = W1^T @ x^T + b1^T
    hid = jnp.dot(w1_ref[...], x_ref[...],
                  preferred_element_type=jnp.float32) + b1_ref[...]
    hid = jnp.maximum(hid, 0.0)

    # GRU: two accumulating gate matmuls (no concat, no zero blocks).
    gi = jnp.dot(wih_ref[...], hid.astype(jnp.bfloat16),
                 preferred_element_type=jnp.float32) + bih_ref[...]
    gh = jnp.dot(whh_ref[...], h.astype(jnp.bfloat16),
                 preferred_element_type=jnp.float32) + bhh_ref[...]

    Hp = h.shape[0]
    r = jax.nn.sigmoid(gi[0 * Hp:1 * Hp] + gh[0 * Hp:1 * Hp])
    z = jax.nn.sigmoid(gi[1 * Hp:2 * Hp] + gh[1 * Hp:2 * Hp])
    n = jnp.tanh(gi[2 * Hp:3 * Hp] + r * gh[2 * Hp:3 * Hp])
    h_new = (1.0 - z) * n + z * h

    # fc2 -> Q-values:  q^T = W2^T @ h_new^T + b2^T
    q_ref[...] = jnp.dot(w2_ref[...], h_new.astype(jnp.bfloat16),
                         preferred_element_type=jnp.float32) + b2_ref[...]
    hout_ref[...] = h_new


# ----------------------------------------------------------------------------
# Parameter preparation: transpose, pad feature dims to sublane multiples,
# split per-gate, cast matmul operands to bf16.
# ----------------------------------------------------------------------------
def prepare_params(p, input_shape, hidden_dim, n_actions):
    D, H, A = input_shape, hidden_dim, n_actions
    Dp = _round_up(D, BF16_SUBLANE)
    Hp = _round_up(H, BF16_SUBLANE)
    Ap = _round_up(A, SUBLANE)

    def padT(w, rows, cols):
        wt = jnp.asarray(w, jnp.float32).T
        return jnp.pad(wt, ((0, rows - wt.shape[0]), (0, cols - wt.shape[1])))

    def gate_w(w, g):                       # (H,3H) -> gate block^T (Hp, Hp)
        return padT(w[:, g * H:(g + 1) * H], Hp, Hp)

    def gate_b(b, g):                       # (1,3H) -> gate bias^T (Hp, 1)
        return padT(b[:, g * H:(g + 1) * H], Hp, 1)

    w1T = padT(p["w1"], Hp, Dp)                                   # (Hp, Dp)
    b1T = padT(p["b1"], Hp, 1)                                    # (Hp, 1)
    wihT = jnp.concatenate([gate_w(p["w_ih"], g) for g in range(3)], axis=0)
    whhT = jnp.concatenate([gate_w(p["w_hh"], g) for g in range(3)], axis=0)
    bihT = jnp.concatenate([gate_b(p["b_ih"], g) for g in range(3)], axis=0)
    bhhT = jnp.concatenate([gate_b(p["b_hh"], g) for g in range(3)], axis=0)
    w2T = padT(p["w2"], Ap, Hp)                                   # (Ap, Hp)
    b2T = padT(p["b2"], Ap, 1)                                    # (Ap, 1)

    bf16 = jnp.bfloat16
    return dict(w1T=w1T.astype(bf16), b1T=b1T,
                wihT=wihT.astype(bf16), bihT=bihT,
                whhT=whhT.astype(bf16), bhhT=bhhT,
                w2T=w2T.astype(bf16), b2T=b2T)


# ----------------------------------------------------------------------------
# Hidden-state helpers (padded, transposed (Hp, Bp) f32 carried across calls)
# ----------------------------------------------------------------------------
def init_hidden(batch, hidden_dim):
    Bp, _, _ = _choose_tiling(batch)
    Hp = _round_up(hidden_dim, BF16_SUBLANE)
    return jnp.zeros((Hp, Bp), jnp.float32)


def pack_hidden(h):
    B, H = h.shape
    Bp, _, _ = _choose_tiling(B)
    Hp = _round_up(H, BF16_SUBLANE)
    return jnp.pad(h.astype(jnp.float32).T, ((0, Hp - H), (0, Bp - B)))


def unpack_hidden(h_tp, batch, hidden_dim):
    return h_tp[:hidden_dim, :batch].T


# ----------------------------------------------------------------------------
# pallas_call wrapper (shared by single-step forward and in-kernel rollout)
# ----------------------------------------------------------------------------
def _rnn_apply(xs, h_tp, prep):
    T, B, D = xs.shape
    Hp, Bp_h = h_tp.shape
    Bp, tile, nb = _choose_tiling(B)
    if Bp != Bp_h:
        raise ValueError(f"hidden state padded batch {Bp_h} != expected {Bp}")
    Dp = prep["w1T"].shape[1]
    Ap = prep["w2T"].shape[0]

    # bf16 before padding (halves the padded-x HBM write), batch-on-lanes.
    xsT = jnp.transpose(xs.astype(jnp.bfloat16), (0, 2, 1))       # (T, D, B)
    xsT = jnp.pad(xsT, ((0, 0), (0, Dp - D), (0, Bp - B)))        # (T, Dp, Bp)

    q_tp, h_new_tp = pl.pallas_call(
        _agent_rnn_kernel,
        grid=(nb, T),
        in_specs=[
            pl.BlockSpec((None, Dp, tile), lambda i, t: (t, 0, i)),   # x_t^T
            pl.BlockSpec((Hp, tile), lambda i, t: (0, i)),            # h0^T
            pl.BlockSpec((Hp, Dp), lambda i, t: (0, 0)),              # W1^T
            pl.BlockSpec((Hp, 1), lambda i, t: (0, 0)),               # b1^T
            pl.BlockSpec((3 * Hp, Hp), lambda i, t: (0, 0)),          # W_ih^T
            pl.BlockSpec((3 * Hp, 1), lambda i, t: (0, 0)),           # b_ih^T
            pl.BlockSpec((3 * Hp, Hp), lambda i, t: (0, 0)),          # W_hh^T
            pl.BlockSpec((3 * Hp, 1), lambda i, t: (0, 0)),           # b_hh^T
            pl.BlockSpec((Ap, Hp), lambda i, t: (0, 0)),              # W2^T
            pl.BlockSpec((Ap, 1), lambda i, t: (0, 0)),               # b2^T
        ],
        out_specs=(
            pl.BlockSpec((None, Ap, tile), lambda i, t: (t, 0, i)),   # q_t^T
            pl.BlockSpec((Hp, tile), lambda i, t: (0, i)),            # h_out^T
        ),
        out_shape=(
            jax.ShapeDtypeStruct((T, Ap, Bp), jnp.float32),
            jax.ShapeDtypeStruct((Hp, Bp), jnp.float32),
        ),
        input_output_aliases={1: 1},            # recurrent state in place
        compiler_params=pltpu.CompilerParams(
            dimension_semantics=("parallel", "arbitrary")),
    )(xsT, h_tp, prep["w1T"], prep["b1T"], prep["wihT"], prep["bihT"],
      prep["whhT"], prep["bhhT"], prep["w2T"], prep["b2T"])
    return q_tp, h_new_tp


@functools.partial(jax.jit, static_argnames=("n_actions",))
def agent_forward(inputs, hidden_tp, prep, *, n_actions):
    """Single-step AgentNetwork.forward(inputs, hidden_state)."""
    B = inputs.shape[0]
    q_tp, h_new_tp = _rnn_apply(inputs[None, ...], hidden_tp, prep)
    q = q_tp[0, :n_actions, :B].T
    return q, h_new_tp


@functools.partial(jax.jit, static_argnames=("n_actions",))
def agent_rollout(inputs_seq, hidden_tp, prep, *, n_actions):
    """T-step rollout with the timestep loop inside the kernel."""
    T, B = inputs_seq.shape[0], inputs_seq.shape[1]
    q_tp, h_new_tp = _rnn_apply(inputs_seq, hidden_tp, prep)
    qs = jnp.transpose(q_tp[:, :n_actions, :B], (0, 2, 1))
    return qs, h_new_tp


# ----------------------------------------------------------------------------
# Parameters & pure-JAX reference (mirrors PyTorch fc1+ReLU+GRUCell+fc2)
# ----------------------------------------------------------------------------
def init_params(key, input_shape, hidden_dim, n_actions):
    ks = jax.random.split(key, 8)
    s = 0.1
    w1 = s * jax.random.normal(ks[0], (input_shape, hidden_dim), jnp.float32)
    b1 = s * jax.random.normal(ks[1], (1, hidden_dim), jnp.float32)
    w_ih = s * jax.random.normal(ks[2], (hidden_dim, 3 * hidden_dim), jnp.float32)
    w_hh = s * jax.random.normal(ks[3], (hidden_dim, 3 * hidden_dim), jnp.float32)
    b_ih = s * jax.random.normal(ks[4], (1, 3 * hidden_dim), jnp.float32)
    b_hh = s * jax.random.normal(ks[5], (1, 3 * hidden_dim), jnp.float32)
    w2 = s * jax.random.normal(ks[6], (hidden_dim, n_actions), jnp.float32)
    b2 = s * jax.random.normal(ks[7], (1, n_actions), jnp.float32)
    return dict(w1=w1, b1=b1, w_ih=w_ih, w_hh=w_hh, b_ih=b_ih, b_hh=b_hh,
                w2=w2, b2=b2)


def reference_forward(inputs, hidden_state, p):
    hid = jnp.maximum(inputs @ p["w1"] + p["b1"], 0.0)
    gi = hid @ p["w_ih"] + p["b_ih"]
    gh = hidden_state @ p["w_hh"] + p["b_hh"]
    H = hidden_state.shape[-1]
    r = jax.nn.sigmoid(gi[:, :H] + gh[:, :H])
    z = jax.nn.sigmoid(gi[:, H:2 * H] + gh[:, H:2 * H])
    n = jnp.tanh(gi[:, 2 * H:] + r * gh[:, 2 * H:])
    h_new = (1.0 - z) * n + z * hidden_state
    q = h_new @ p["w2"] + p["b2"]
    return q, h_new


def reference_rollout(xs, h0, p):
    h = h0
    qs = []
    for t in range(xs.shape[0]):
        q, h = reference_forward(xs[t], h, p)
        qs.append(q)
    return jnp.stack(qs, axis=0), h


if __name__ == "__main__":
    key = jax.random.PRNGKey(0)
    k_in, k_h, k_p, k_seq = jax.random.split(key, 4)

    # Small, module-consistent shapes: (batch*agents, obs_dim) + hidden state.
    batch_agents = 8       # e.g. batch=2 episodes * 4 agents
    input_shape = 32       # observation dim
    hidden_dim = 32        # args.rnn_hidden_dim
    n_actions = 8          # args.n_actions
    T = 6                  # rollout length for the in-kernel timestep loop

    inputs = jax.random.normal(k_in, (batch_agents, input_shape), jnp.float32)
    hidden = jax.random.normal(k_h, (batch_agents, hidden_dim), jnp.float32)
    params = init_params(k_p, input_shape, hidden_dim, n_actions)
    prep = prepare_params(params, input_shape, hidden_dim, n_actions)

    # ---- single-step forward (module signature) ----
    h_tp = pack_hidden(hidden)
    q, h_new_tp = agent_forward(inputs, h_tp, prep, n_actions=n_actions)
    jax.block_until_ready((q, h_new_tp))

    q_ref, h_ref = reference_forward(inputs, hidden, params)
    h_new = unpack_hidden(h_new_tp, batch_agents, hidden_dim)
    assert q.shape == (batch_agents, n_actions)
    assert h_new.shape == (batch_agents, hidden_dim)
    # bf16 matmul operands with f32 accumulation -> loose-but-tight-enough tol.
    assert jnp.allclose(q, q_ref, atol=2e-2, rtol=2e-2), \
        float(jnp.max(jnp.abs(q - q_ref)))
    assert jnp.allclose(h_new, h_ref, atol=2e-2, rtol=2e-2), \
        float(jnp.max(jnp.abs(h_new - h_ref)))

    # ---- T-step rollout with the timestep loop inside the kernel ----
    xs = jax.random.normal(k_seq, (T, batch_agents, input_shape), jnp.float32)
    h0_tp = init_hidden(batch_agents, hidden_dim)
    qs, hT_tp = agent_rollout(xs, h0_tp, prep, n_actions=n_actions)
    jax.block_until_ready((qs, hT_tp))

    qs_ref, hT_ref = reference_rollout(
        xs, jnp.zeros((batch_agents, hidden_dim), jnp.float32), params)
    hT = unpack_hidden(hT_tp, batch_agents, hidden_dim)
    assert qs.shape == (T, batch_agents, n_actions)
    assert jnp.allclose(qs, qs_ref, atol=3e-2, rtol=3e-2), \
        float(jnp.max(jnp.abs(qs - qs_ref)))
    assert jnp.allclose(hT, hT_ref, atol=3e-2, rtol=3e-2), \
        float(jnp.max(jnp.abs(hT - hT_ref)))

    print("KERNEL_OK")
</pallas_src>

<mosaic_0001>
module attributes {stable_mosaic.version = 11 : i64} {
  func.func @_agent_rnn_kernel(%arg0: i32, %arg1: i32, %arg2: memref<1x32x128xbf16, #tpu.memory_space<vmem>>, %arg3: memref<32x128xf32, #tpu.memory_space<vmem>>, %arg4: memref<32x32xbf16, #tpu.memory_space<vmem>>, %arg5: memref<32x1xf32, #tpu.memory_space<vmem>>, %arg6: memref<96x32xbf16, #tpu.memory_space<vmem>>, %arg7: memref<96x1xf32, #tpu.memory_space<vmem>>, %arg8: memref<96x32xbf16, #tpu.memory_space<vmem>>, %arg9: memref<96x1xf32, #tpu.memory_space<vmem>>, %arg10: memref<8x32xbf16, #tpu.memory_space<vmem>>, %arg11: memref<8x1xf32, #tpu.memory_space<vmem>>, %arg12: memref<1x8x128xf32, #tpu.memory_space<vmem>>, %arg13: memref<32x128xf32, #tpu.memory_space<vmem>>) attributes {dimension_semantics = [#tpu.dimension_semantics<parallel>, #tpu.dimension_semantics<arbitrary>], iteration_bounds = array<i64: 1, 1>, scalar_prefetch = 0 : i64, scratch_operands = 0 : i64, tpu.core_type = #tpu.core_type<tc>, window_params = [{transform_indices = @transform_0, window_bounds = array<i64: 1, 32, 128>}, {transform_indices = @transform_1, window_bounds = array<i64: 32, 128>}, {pipeline_mode = #tpu.pipeline_mode<synchronous>, transform_indices = @transform_2, window_bounds = array<i64: 32, 32>}, {pipeline_mode = #tpu.pipeline_mode<synchronous>, transform_indices = @transform_3, window_bounds = array<i64: 32, 1>}, {pipeline_mode = #tpu.pipeline_mode<synchronous>, transform_indices = @transform_4, window_bounds = array<i64: 96, 32>}, {pipeline_mode = #tpu.pipeline_mode<synchronous>, transform_indices = @transform_5, window_bounds = array<i64: 96, 1>}, {pipeline_mode = #tpu.pipeline_mode<synchronous>, transform_indices = @transform_6, window_bounds = array<i64: 96, 32>}, {pipeline_mode = #tpu.pipeline_mode<synchronous>, transform_indices = @transform_7, window_bounds = array<i64: 96, 1>}, {pipeline_mode = #tpu.pipeline_mode<synchronous>, transform_indices = @transform_8, window_bounds = array<i64: 8, 32>}, {pipeline_mode = #tpu.pipeline_mode<synchronous>, transform_indices = @transform_9, window_bounds = array<i64: 8, 1>}, {transform_indices = @transform_10, window_bounds = array<i64: 1, 8, 128>}, {transform_indices = @transform_11, window_bounds = array<i64: 32, 128>}]} {
    %c0_i32 = arith.constant 0 : i32
    %0 = arith.cmpi eq, %arg1, %c0_i32 : i32
    %1 = arith.extui %0 : i1 to i32
    %c0_i32_0 = arith.constant 0 : i32
    %2 = arith.cmpi ne, %1, %c0_i32_0 : i32
    scf.if %2 {
      %c0_33 = arith.constant 0 : index
      %c0_34 = arith.constant 0 : index
      %61 = vector.load %arg3[%c0_33, %c0_34] : memref<32x128xf32, #tpu.memory_space<vmem>>, vector<32x128xf32>
      %c0_35 = arith.constant 0 : index
      %c0_36 = arith.constant 0 : index
      %62 = vector.load %arg13[%c0_35, %c0_36] : memref<32x128xf32, #tpu.memory_space<vmem>>, vector<32x128xf32>
      tpu.vector_store %arg13[%c0_35, %c0_36], %61 {strides = array<i32>} : memref<32x128xf32, #tpu.memory_space<vmem>>, vector<32x128xf32>,
    } else {
    }
    %c0 = arith.constant 0 : index
    %c0_1 = arith.constant 0 : index
    %3 = vector.load %arg13[%c0, %c0_1] : memref<32x128xf32, #tpu.memory_space<vmem>>, vector<32x128xf32>
    %c0_2 = arith.constant 0 : index
    %c0_3 = arith.constant 0 : index
    %4 = vector.load %arg4[%c0_2, %c0_3] : memref<32x32xbf16, #tpu.memory_space<vmem>>, vector<32x32xbf16>
    %c0_4 = arith.constant 0 : index
    %c0_5 = arith.constant 0 : index
    %c0_6 = arith.constant 0 : index
    %5 = vector.load %arg2[%c0_4, %c0_5, %c0_6] : memref<1x32x128xbf16, #tpu.memory_space<vmem>>, vector<1x32x128xbf16>
    %6 = vector.shape_cast %5 : vector<1x32x128xbf16> to vector<32x128xbf16>
    %cst = arith.constant dense<0.000000e+00> : vector<32x128xf32>
    %7 = tpu.matmul %4, %6, %cst {dimension_numbers = #tpu.dot_dimension_numbers<[1], [0], [0], [1], [0, 0, 1, 1], [], []>} : vector<32x32xbf16>, vector<32x128xbf16>, vector<32x128xf32> -> vector<32x128xf32>
    %c0_7 = arith.constant 0 : index
    %c0_8 = arith.constant 0 : index
    %8 = vector.load %arg5[%c0_7, %c0_8] : memref<32x1xf32, #tpu.memory_space<vmem>>, vector<32x1xf32>
    %9 = vector.broadcast %8 : vector<32x1xf32> to vector<32x128xf32>
    %10 = arith.addf %7, %9 : vector<32x128xf32>
    %cst_9 = arith.constant 0.000000e+00 : f32
    %11 = vector.broadcast %cst_9 : f32 to vector<32x128xf32>
    %12 = arith.maximumf %10, %11 : vector<32x128xf32>
    %c0_10 = arith.constant 0 : index
    %c0_11 = arith.constant 0 : index
    %13 = vector.load %arg6[%c0_10, %c0_11] : memref<96x32xbf16, #tpu.memory_space<vmem>>, vector<96x32xbf16>
    %14 = arith.truncf %12 : vector<32x128xf32> to vector<32x128xbf16>
    %cst_12 = arith.constant dense<0.000000e+00> : vector<96x128xf32>
    %15 = tpu.matmul %13, %14, %cst_12 {dimension_numbers = #tpu.dot_dimension_numbers<[1], [0], [0], [1], [0, 0, 1, 1], [], []>} : vector<96x32xbf16>, vector<32x128xbf16>, vector<96x128xf32> -> vector<96x128xf32>
    %c0_13 = arith.constant 0 : index
    %c0_14 = arith.constant 0 : index
    %16 = vector.load %arg7[%c0_13, %c0_14] : memref<96x1xf32, #tpu.memory_space<vmem>>, vector<96x1xf32>
    %17 = vector.broadcast %16 : vector<96x1xf32> to vector<96x128xf32>
    %18 = arith.addf %15, %17 : vector<96x128xf32>
    %c0_15 = arith.constant 0 : index
    %c0_16 = arith.constant 0 : index
    %19 = vector.load %arg8[%c0_15, %c0_16] : memref<96x32xbf16, #tpu.memory_space<vmem>>, vector<96x32xbf16>
    %20 = arith.truncf %3 : vector<32x128xf32> to vector<32x128xbf16>
    %cst_17 = arith.constant dense<0.000000e+00> : vector<96x128xf32>
    %21 = tpu.matmul %19, %20, %cst_17 {dimension_numbers = #tpu.dot_dimension_numbers<[1], [0], [0], [1], [0, 0, 1, 1], [], []>} : vector<96x32xbf16>, vector<32x128xbf16>, vector<96x128xf32> -> vector<96x128xf32>
    %c0_18 = arith.constant 0 : index
    %c0_19 = arith.constant 0 : index
    %22 = vector.load %arg9[%c0_18, %c0_19] : memref<96x1xf32, #tpu.memory_space<vmem>>, vector<96x1xf32>
    %23 = vector.broadcast %22 : vector<96x1xf32> to vector<96x128xf32>
    %24 = arith.addf %21, %23 : vector<96x128xf32>
    %25 = vector.extract_strided_slice %18 {offsets = [0, 0], sizes = [32, 128], strides = [1, 1]} : vector<96x128xf32> to vector<32x128xf32>
    %26 = vector.extract_strided_slice %24 {offsets = [0, 0], sizes = [32, 128], strides = [1, 1]} : vector<96x128xf32> to vector<32x128xf32>
    %27 = arith.addf %25, %26 : vector<32x128xf32>
    %28 = arith.negf %27 : vector<32x128xf32>
    %29 = math.exp %28 : vector<32x128xf32>
    %cst_20 = arith.constant 1.000000e+00 : f32
    %30 = vector.broadcast %cst_20 : f32 to vector<32x128xf32>
    %31 = arith.addf %30, %29 : vector<32x128xf32>
    %32 = arith.divf %30, %31 : vector<32x128xf32>
    %33 = vector.extract_strided_slice %18 {offsets = [32, 0], sizes = [32, 128], strides = [1, 1]} : vector<96x128xf32> to vector<32x128xf32>
    %34 = vector.extract_strided_slice %24 {offsets = [32, 0], sizes = [32, 128], strides = [1, 1]} : vector<96x128xf32> to vector<32x128xf32>
    %35 = arith.addf %33, %34 : vector<32x128xf32>
    %36 = arith.negf %35 : vector<32x128xf32>
    %37 = math.exp %36 : vector<32x128xf32>
    %cst_21 = arith.constant 1.000000e+00 : f32
    %38 = vector.broadcast %cst_21 : f32 to vector<32x128xf32>
    %39 = arith.addf %38, %37 : vector<32x128xf32>
    %40 = arith.divf %38, %39 : vector<32x128xf32>
    %41 = vector.extract_strided_slice %18 {offsets = [64, 0], sizes = [32, 128], strides = [1, 1]} : vector<96x128xf32> to vector<32x128xf32>
    %42 = vector.extract_strided_slice %24 {offsets = [64, 0], sizes = [32, 128], strides = [1, 1]} : vector<96x128xf32> to vector<32x128xf32>
    %43 = arith.mulf %32, %42 : vector<32x128xf32>
    %44 = arith.addf %41, %43 : vector<32x128xf32>
    %45 = math.tanh %44 : vector<32x128xf32>
    %cst_22 = arith.constant 1.000000e+00 : f32
    %46 = vector.broadcast %cst_22 : f32 to vector<32x128xf32>
    %47 = arith.subf %46, %40 : vector<32x128xf32>
    %48 = arith.mulf %47, %45 : vector<32x128xf32>
    %49 = arith.mulf %40, %3 : vector<32x128xf32>
    %50 = arith.addf %48, %49 : vector<32x128xf32>
    %c0_23 = arith.constant 0 : index
    %c0_24 = arith.constant 0 : index
    %51 = vector.load %arg10[%c0_23, %c0_24] : memref<8x32xbf16, #tpu.memory_space<vmem>>, vector<8x32xbf16>
    %52 = arith.truncf %50 : vector<32x128xf32> to vector<32x128xbf16>
    %cst_25 = arith.constant dense<0.000000e+00> : vector<8x128xf32>
    %53 = tpu.matmul %51, %52, %cst_25 {dimension_numbers = #tpu.dot_dimension_numbers<[1], [0], [0], [1], [0, 0, 1, 1], [], []>} : vector<8x32xbf16>, vector<32x128xbf16>, vector<8x128xf32> -> vector<8x128xf32>
    %c0_26 = arith.constant 0 : index
    %c0_27 = arith.constant 0 : index
    %54 = vector.load %arg11[%c0_26, %c0_27] : memref<8x1xf32, #tpu.memory_space<vmem>>, vector<8x1xf32>
    %55 = vector.broadcast %54 : vector<8x1xf32> to vector<8x128xf32>
    %56 = arith.addf %53, %55 : vector<8x128xf32>
    %c0_28 = arith.constant 0 : index
    %c0_29 = arith.constant 0 : index
    %c0_30 = arith.constant 0 : index
    %57 = vector.load %arg12[%c0_28, %c0_29, %c0_30] : memref<1x8x128xf32, #tpu.memory_space<vmem>>, vector<1x8x128xf32>
    %58 = vector.shape_cast %57 : vector<1x8x128xf32> to vector<8x128xf32>
    %59 = vector.shape_cast %56 : vector<8x128xf32> to vector<1x8x128xf32>
    tpu.vector_store %arg12[%c0_28, %c0_29, %c0_30], %59 {strides = array<i32>} : memref<1x8x128xf32, #tpu.memory_space<vmem>>, vector<1x8x128xf32>,
    %c0_31 = arith.constant 0 : index
    %c0_32 = arith.constant 0 : index
    %60 = vector.load %arg13[%c0_31, %c0_32] : memref<32x128xf32, #tpu.memory_space<vmem>>, vector<32x128xf32>
    tpu.vector_store %arg13[%c0_31, %c0_32], %50 {strides = array<i32>} : memref<32x128xf32, #tpu.memory_space<vmem>>, vector<32x128xf32>,
    return
  }
  func.func @transform_0(%arg0: i32, %arg1: i32) -> (i32, i32, i32) {
    %c0_i32 = arith.constant 0 : i32
    %c0_i32_0 = arith.constant 0 : i32
    return %arg1, %c0_i32, %arg0 : i32, i32, i32
  }
  func.func @transform_1(%arg0: i32, %arg1: i32) -> (i32, i32) {
    %c0_i32 = arith.constant 0 : i32
    %c0_i32_0 = arith.constant 0 : i32
    return %c0_i32, %arg0 : i32, i32
  }
  func.func @transform_2(%arg0: i32, %arg1: i32) -> (i32, i32) {
    %c0_i32 = arith.constant 0 : i32
    %c0_i32_0 = arith.constant 0 : i32
    %c0_i32_1 = arith.constant 0 : i32
    return %c0_i32, %c0_i32_0 : i32, i32
  }
  func.func @transform_3(%arg0: i32, %arg1: i32) -> (i32, i32) {
    %c0_i32 = arith.constant 0 : i32
    %c0_i32_0 = arith.constant 0 : i32
    %c0_i32_1 = arith.constant 0 : i32
    return %c0_i32, %c0_i32_0 : i32, i32
  }
  func.func @transform_4(%arg0: i32, %arg1: i32) -> (i32, i32) {
    %c0_i32 = arith.constant 0 : i32
    %c0_i32_0 = arith.constant 0 : i32
    %c0_i32_1 = arith.constant 0 : i32
    return %c0_i32, %c0_i32_0 : i32, i32
  }
  func.func @transform_5(%arg0: i32, %arg1: i32) -> (i32, i32) {
    %c0_i32 = arith.constant 0 : i32
    %c0_i32_0 = arith.constant 0 : i32
    %c0_i32_1 = arith.constant 0 : i32
    return %c0_i32, %c0_i32_0 : i32, i32
  }
  func.func @transform_6(%arg0: i32, %arg1: i32) -> (i32, i32) {
    %c0_i32 = arith.constant 0 : i32
    %c0_i32_0 = arith.constant 0 : i32
    %c0_i32_1 = arith.constant 0 : i32
    return %c0_i32, %c0_i32_0 : i32, i32
  }
  func.func @transform_7(%arg0: i32, %arg1: i32) -> (i32, i32) {
    %c0_i32 = arith.constant 0 : i32
    %c0_i32_0 = arith.constant 0 : i32
    %c0_i32_1 = arith.constant 0 : i32
    return %c0_i32, %c0_i32_0 : i32, i32
  }
  func.func @transform_8(%arg0: i32, %arg1: i32) -> (i32, i32) {
    %c0_i32 = arith.constant 0 : i32
    %c0_i32_0 = arith.constant 0 : i32
    %c0_i32_1 = arith.constant 0 : i32
    return %c0_i32, %c0_i32_0 : i32, i32
  }
  func.func @transform_9(%arg0: i32, %arg1: i32) -> (i32, i32) {
    %c0_i32 = arith.constant 0 : i32
    %c0_i32_0 = arith.constant 0 : i32
    %c0_i32_1 = arith.constant 0 : i32
    return %c0_i32, %c0_i32_0 : i32, i32
  }
  func.func @transform_10(%arg0: i32, %arg1: i32) -> (i32, i32, i32) {
    %c0_i32 = arith.constant 0 : i32
    %c0_i32_0 = arith.constant 0 : i32
    return %arg1, %c0_i32, %arg0 : i32, i32, i32
  }
  func.func @transform_11(%arg0: i32, %arg1: i32) -> (i32, i32) {
    %c0_i32 = arith.constant 0 : i32
    %c0_i32_0 = arith.constant 0 : i32
    return %c0_i32, %arg0 : i32, i32
  }
}

</mosaic_0001>

<bundles_post_ra>
// kernel: agent_forward.1
= control target key start
LH: loop header
LB: loop body
LE: loop exit
PB: predicated region body
PF: predicated region fallthrough
CT: control target
= control target key end

     0   :  { %v918_v1 = vmov 0   ;;  %vm108_vm0 = vcmask 261120   ;;  %vm920_vm1 = vmmov 0   ;;  %s1180_s0 = inlined_call_operand.vmem [shape: bf16[1,32,128], index: 0, kind: input, shape index: {}]   ;;  %s1181_s2 = inlined_call_operand.vmem [shape: bf16[32,32], index: 2, kind: input, shape index: {}]   ;;  %s1182_s1 = inlined_call_operand.vmem [shape: f32[32,128], index: 1, kind: input, shape index: {}, may-alias: {1,11}]   ;;  %s1183_s6 = inlined_call_operand.vmem [shape: bf16[96,32], index: 6, kind: input, shape index: {}]   ;;  %s1184_s3 = inlined_call_operand.vmem [shape: f32[32,1], index: 3, kind: input, shape index: {}]   ;;  %s1185_s5 = inlined_call_operand.vmem [shape: f32[96,1], index: 5, kind: input, shape index: {}]   ;;  %s1186_s7 = inlined_call_operand.vmem [shape: f32[96,1], index: 7, kind: input, shape index: {}]   ;;  %s1187_s9 = inlined_call_operand.vmem [shape: f32[8,1], index: 9, kind: input, shape index: {}]   ;;  %s1188_s4 = inlined_call_operand.vmem [shape: bf16[96,32], index: 4, kind: input, shape index: {}]   ;;  %s1189_s11 = inlined_call_operand.vmem [shape: f32[32,128], index: 11, kind: output, shape index: {1}, may-alias: {1,11}]   ;;  %s1190_s8 = inlined_call_operand.vmem [shape: bf16[8,32], index: 8, kind: input, shape index: {}]   ;;  %s1191_s10 = inlined_call_operand.vmem [shape: f32[1,8,128], index: 10, kind: output, shape index: {0}]  }
   0x1   :  { %v862_v0 = vld [vmem:[%s1180_s0 + $0x8] sm:$0xff]   ;;  %860 = vset.pattern.permute.xlu0 %v918_v1  ;;  %861 = vset.pattern.permute.xlu1 %v918_v1  ;;  %v863_v2 = vld [vmem:[%s1180_s0] sm:$0xff]   ;;  %v994_v4 = vld [vmem:[%s1182_s1 + $0x10] sm:$0xff] }
   0x2   :  { %809 = vmatprep.subr.bf16.mxu0 %v862_v0  ;;  %v864_v3 = vld [vmem:[%s1181_s2] sm:$0xff]   ;;  %v999_v5 = vld [vmem:[%s1182_s1 + $0x18] sm:$0xff]  ;;  %v1011_v8 = vld [vmem:[%s1182_s1 + $0x8] sm:$0xff] }
   0x3   :  { %810 = vmatpush3.bf16.msra.mxu0 %v862_v0  ;;  %813 = vmatprep.mubr.msk.bf16.mxu0 %vm108_vm0, %v864_v3  ;;  %v1004_v6 = vld [vmem:[%s1182_s1] sm:$0xff]  ;;  %v396_v7 = vpack.c.bf16 %v999_v5, %v994_v4  ;;  %v865_v9 = vld [vmem:[%s1181_s2 + $0x8] sm:$0xff]   ;;  %v64_v11 = vld [vmem:[%s1184_s3 + $0x10] sm:$0xff] }
   0x4   :  { %811 = vmatprep.subr.bf16.mxu0 %v863_v2  ;;  %v866_v10 = vld [vmem:[%s1183_s6] sm:$0xff]   ;;  %v395_v12 = vpack.c.bf16 %v1011_v8, %v1004_v6  ;;  %78 = vperm.xlu0 %860, %v64_v11   ;;  %v65_v13 = vld [vmem:[%s1184_s3 + $0x18] sm:$0xff]  ;;  %v184_v15 = vld [vmem:[%s1185_s5 + $0x10] sm:$0xff] }
   0x5   :  { %v62_v14 = vld [vmem:[%s1184_s3] sm:$0xff]  ;;  %v867_v16 = vld [vmem:[%s1183_s6 + $0x8] sm:$0xff]   ;;  %v868_v18 = vld [vmem:[%s1183_s6 + $0x10] sm:$0xff]  }
   0x6   :  { %68 = vperm.xlu1 %861, %v62_v14   ;;  %v63_v17 = vld [vmem:[%s1184_s3 + $0x8] sm:$0xff]  ;;  %v399_v19 = vld [vmem:[%s1186_s7 + $0x10] sm:$0xff]  ;;  %v185_v20 = vld [vmem:[%s1185_s5 + $0x18] sm:$0xff] }
   0x7   :  { %812 = vmatpush3.bf16.msra.mxu0 %v863_v2  ;;  %v182_v21 = vld [vmem:[%s1185_s5] sm:$0xff]  ;;  %v869_v22 = vld [vmem:[%s1183_s6 + $0x18] sm:$0xff]   ;;  %v183_v26 = vld [vmem:[%s1185_s5 + $0x8] sm:$0xff] }
   0x8   :  { %833 = vmatprep.subr.bf16.mxu0 %v396_v7  ;;  %83 = vperm.xlu0 %860, %v65_v13   ;;  %v400_v23 = vld [vmem:[%s1186_s7 + $0x18] sm:$0xff]  ;;  %v870_v24 = vld [vmem:[%s1183_s6 + $0x20] sm:$0xff]   ;;  %v188_v27 = vld [vmem:[%s1185_s5 + $0x30] sm:$0xff] }
   0x9   :  { %v397_v25 = vld [vmem:[%s1186_s7] sm:$0xff]  ;;  %v871_v28 = vld [vmem:[%s1183_s6 + $0x28] sm:$0xff]   ;;  %v403_v30 = vld [vmem:[%s1186_s7 + $0x30] sm:$0xff] }
   0xa   :  { %814 = vmatmul.mubr.msk.bf16.vlgmr.msra.gmra.mxu0 %vm108_vm0, %v865_v9  ;;  %73 = vperm.xlu1 %861, %v63_v17   ;;  %v398_v29 = vld [vmem:[%s1186_s7 + $0x8] sm:$0xff]  ;;  %v189_v31 = vld [vmem:[%s1185_s5 + $0x38] sm:$0xff]  ;;  %v186_v32 = vld [vmem:[%s1185_s5 + $0x20] sm:$0xff] }
   0xb   :  { %834 = vmatpush3.bf16.msra.mxu0 %v396_v7  ;;  %837 = vmatprep.mubr.msk.bf16.mxu0 %vm108_vm0, %v866_v10  ;;  %v404_v33 = vld [vmem:[%s1186_s7 + $0x38] sm:$0xff]  ;;  %v401_v34 = vld [vmem:[%s1186_s7 + $0x20] sm:$0xff]  ;;  %v187_v35 = vld [vmem:[%s1185_s5 + $0x28] sm:$0xff]  ;;  %v919_v10 = vmov 0.0  }
   0xc   :  { %835 = vmatprep.subr.bf16.mxu0 %v395_v12  ;;  %206 = vperm.xlu0 %860, %v184_v15   ;;  %v407_v36 = vld [vmem:[%s1186_s7 + $0x50] sm:$0xff]  ;;  %v402_v37 = vld [vmem:[%s1186_s7 + $0x28] sm:$0xff]  ;;  %v408_v39 = vld [vmem:[%s1186_s7 + $0x58] sm:$0xff] }
   0xd   :  { %v192_v38 = vld [vmem:[%s1185_s5 + $0x50] sm:$0xff]  ;;  %v405_v40 = vld [vmem:[%s1186_s7 + $0x40] sm:$0xff]  ;;  %v193_v41 = vld [vmem:[%s1185_s5 + $0x58] sm:$0xff] }
   0xe   :  { %211 = vperm.xlu1 %861, %v185_v20   ;;  %v190_v42 = vld [vmem:[%s1185_s5 + $0x40] sm:$0xff]  ;;  %v406_v43 = vld [vmem:[%s1186_s7 + $0x48] sm:$0xff]  ;;  %v874_v2 = vld [vmem:[%s1188_s4 + $0x10] sm:$0xff]  }
   0xf   :  { %836 = vmatpush3.bf16.msra.mxu0 %v395_v12  ;;  %v685_v44 = vld [vmem:[%s1187_s9] sm:$0xff]  ;;  %v191_v45 = vld [vmem:[%s1185_s5 + $0x48] sm:$0xff]  ;;  %v875_v3 = vld [vmem:[%s1188_s4 + $0x18] sm:$0xff]  }
  0x10   :  { %421 = vperm.xlu0 %860, %v399_v19   ;;  %v872_v46 = vld [vmem:[%s1188_s4] sm:$0xff]   ;;  %v873_v1 = vld [vmem:[%s1188_s4 + $0x8] sm:$0xff]  }
  0x11   :  { %821 = vmatprep.mubr.msk.bf16.mxu1 %vm108_vm0, %v872_v46  ;;  %v876_v7 = vld [vmem:[%s1188_s4 + $0x20] sm:$0xff]   ;;  %v877_v9 = vld [vmem:[%s1188_s4 + $0x28] sm:$0xff]  }
  0x12   :  { %838 = vmatmul.mubr.msk.bf16.vlgmr.msra.gmra.mxu0 %vm108_vm0, %v867_v16  ;;  %426 = vperm.xlu1 %861, %v400_v23  }
  0x13   :  { %841 = vmatprep.mubr.msk.bf16.mxu0 %vm108_vm0, %v868_v18 }
  0x14   :  { %196 = vperm.xlu0 %860, %v182_v21  }
  0x16   :  { %201 = vperm.xlu1 %861, %v183_v26  }
  0x18   :  { %411 = vperm.xlu0 %860, %v397_v25  }
  0x1a   :  { %842 = vmatmul.mubr.msk.bf16.gmra.mxu0 %vm108_vm0, %v869_v22  ;;  %416 = vperm.xlu1 %861, %v398_v29  }
  0x1b   :  { %845 = vmatprep.mubr.msk.bf16.mxu0 %vm108_vm0, %v870_v24 }
  0x1c   :  { %226 = vperm.xlu0 %860, %v188_v27  }
  0x1e   :  { %231 = vperm.xlu1 %861, %v189_v31  }
  0x20   :  { %441 = vperm.xlu0 %860, %v403_v30  }
  0x22   :  { %846 = vmatmul.mubr.msk.bf16.gmra.mxu0 %vm108_vm0, %v871_v28  ;;  %446 = vperm.xlu1 %861, %v404_v33  }
  0x24   :  { %216 = vperm.xlu0 %860, %v186_v32  }
  0x26   :  { %221 = vperm.xlu1 %861, %v187_v35  }
  0x28   :  { %431 = vperm.xlu0 %860, %v401_v34  }
  0x2a   :  { %436 = vperm.xlu1 %861, %v402_v37  }
  0x2c   :  { %461 = vperm.xlu0 %860, %v407_v36  }
  0x2e   :  { %466 = vperm.xlu1 %861, %v408_v39  }
  0x30   :  { %246 = vperm.xlu0 %860, %v192_v38  }
  0x32   :  { %251 = vperm.xlu1 %861, %v193_v41  }
  0x34   :  { %451 = vperm.xlu0 %860, %v405_v40  }
  0x36   :  { %456 = vperm.xlu1 %861, %v406_v43  }
  0x38   :  { %236 = vperm.xlu0 %860, %v190_v42  }
  0x3a   :  { %241 = vperm.xlu1 %861, %v191_v45  }
  0x3c   :  { %688 = vperm.xlu0 %860, %v685_v44  }
  0x7f   :  { %v79_v47 = vpop.permute.xlu0 %78 }
  0x81   :  { %v69_v48 = vpop.permute.xlu1 %68 }
  0x83   :  { %v84_v52 = vpop.permute.xlu0 %83 }
  0x85   :  { %v74_v56 = vpop.permute.xlu1 %73 }
  0x87   :  { %v207_v11 = vpop.permute.xlu0 %206 }
  0x89   :  { %v212_v12 = vpop.permute.xlu1 %211 }
  0x8b   :  { %v422_v13 = vpop.permute.xlu0 %421 }
  0x8d   :  { %v427_v14 = vpop.permute.xlu1 %426 }
  0x8f   :  { %v197_v15 = vpop.permute.xlu0 %196 }
  0x91   :  { %v202_v16 = vpop.permute.xlu1 %201 }
  0x93   :  { %v412_v18 = vpop.permute.xlu0 %411 }
  0x95   :  { %v417_v20 = vpop.permute.xlu1 %416 }
  0x97   :  { %v227_v21 = vpop.permute.xlu0 %226 }
  0x99   :  { %v232_v23 = vpop.permute.xlu1 %231 }
  0x9b   :  { %v442_v25 = vpop.permute.xlu0 %441 }
  0x9d   :  { %v447_v28 = vpop.permute.xlu1 %446 }
  0x9f   :  { %v217_v32 = vpop.permute.xlu0 %216 }
  0xa1   :  { %v222_v44 = vpop.permute.xlu1 %221 }
  0xca   :  { %v815_v49 = vpop.f32.mrf.mxu0 }
  0xcb   :  { %v158_v51 = vadd.f32 %v815_v49, %v79_v47 }
  0xcc   :  { %v149_v50 = vpop.f32.mrf.mxu0 }
  0xcd   :  { %v150_v54 = vadd.f32 %v149_v50, %v69_v48  ;;  %v166_v58 = vmax.f32 %v158_v51, 0.0  ;;  %v432_v51 = vpop.permute.xlu0 %431 }
  0xce   :  { %v816_v53 = vpop.f32.mrf.mxu0 }
  0xcf   :  { %v161_v55 = vadd.f32 %v816_v53, %v84_v52  ;;  %v164_v61 = vmax.f32 %v150_v54, 0.0 }
  0xd0   :  { %v152_v57 = vpop.f32.mrf.mxu0 }
  0xd1   :  { %v167_v59 = vmax.f32 %v161_v55, 0.0  ;;  %v153_v60 = vadd.f32 %v152_v57, %v74_v56 }
  0xd2   :  { %v839_v17 = vpop.f32.mrf.mxu0 }
  0xd3   :  { %v165_v62 = vmax.f32 %v153_v60, 0.0  ;;  %v181_v63 = vpack.c.bf16 %v167_v59, %v166_v58  ;;  %v560_v29 = vadd.f32 %v839_v17, %v422_v13  ;;  %v462_v17 = vpop.permute.xlu0 %461 }
  0xd4   :  { %v551_v19 = vpop.f32.mrf.mxu0 }
  0xd5   :  { %v180_v0 = vpack.c.bf16 %v165_v62, %v164_v61  ;;  %817 = vmatprep.subr.bf16.mxu1 %v181_v63  ;;  %v552_v33 = vadd.f32 %v551_v19, %v412_v18 }
  0xd6   :  { %818 = vmatpush3.bf16.msra.mxu1 %v181_v63  ;;  %v840_v22 = vpop.f32.mrf.mxu0 }
  0xd7   :  { %819 = vmatprep.subr.bf16.mxu1 %v180_v0  ;;  %v563_v38 = vadd.f32 %v840_v22, %v427_v14 }
  0xd8   :  { %v554_v24 = vpop.f32.mrf.mxu0 }
  0xd9   :  { %v555_v42 = vadd.f32 %v554_v24, %v417_v20 }
  0xda   :  { %820 = vmatpush3.bf16.msra.mxu1 %v180_v0  ;;  %v843_v26 = vpop.f32.mrf.mxu0 }
  0xdb   :  { %849 = vmatprep.subr.bf16.mxu1 %v919_v10  ;;  %v576_v48 = vadd.f32 %v843_v26, %v442_v25  ;;  %v247_v26 = vpop.permute.xlu0 %246 }
  0xdc   :  { %v567_v36 = vpop.f32.mrf.mxu0 }
  0xdd   :  { %822 = vmatmul.mubr.msk.bf16.vlgmr.msra.gmra.mxu1 %vm108_vm0, %v873_v1  ;;  %v568_v55 = vadd.f32 %v567_v36, %v432_v51 }
  0xde   :  { %825 = vmatprep.mubr.msk.bf16.mxu1 %vm108_vm0, %v874_v2  ;;  %v844_v49 = vpop.f32.mrf.mxu0  ;;  %v437_v2 = vpop.permute.xlu1 %436 }
  0xdf   :  { %v579_v60 = vadd.f32 %v844_v49, %v447_v28 }
  0xe0   :  { %v570_v61 = vpop.f32.mrf.mxu0 }
  0xe2   :  { %v467_v22 = vpop.permute.xlu1 %466 }
  0xe5   :  { %826 = vmatmul.mubr.msk.bf16.gmra.mxu1 %vm108_vm0, %v875_v3 }
  0xe6   :  { %829 = vmatprep.mubr.msk.bf16.mxu1 %vm108_vm0, %v876_v7  ;;  %v571_v7 = vadd.f32 %v570_v61, %v437_v2 }
  0xed   :  { %830 = vmatmul.mubr.msk.bf16.gmra.mxu1 %vm108_vm0, %v877_v9 }
  0xee   :  { %853 = vmatprep.mubr.msk.bf16.mxu1 %vm920_vm1, %v919_v10 }
 0x19d   :  { %v823_v27 = vpop.f32.mrf.mxu1 }
 0x19e   :  { %v345_v30 = vadd.f32 %v823_v27, %v207_v11 }
 0x19f   :  { %v336_v31 = vpop.f32.mrf.mxu1 }
 0x1a0   :  { %v600_v34 = vadd.f32 %v560_v29, %v345_v30  ;;  %v337_v35 = vadd.f32 %v336_v31, %v197_v15  ;;  %v252_v31 = vpop.permute.xlu1 %251 }
 0x1a1   :  { %v824_v37 = vpop.f32.mrf.mxu1 }
 0x1a2   :  { %v779_v39 = vmul.f32 -1.442695, %v600_v34  ;;  %v598_v40 = vadd.f32 %v552_v33, %v337_v35  ;;  %v348_v41 = vadd.f32 %v824_v37, %v212_v12  ;;  %v452_v33 = vpop.permute.xlu0 %451 }
 0x1a3   :  { %v339_v43 = vpop.f32.mrf.mxu1 }
 0x1a4   :  { %878 = vpow2.f32 %v779_v39  ;;  %v777_v45 = vmul.f32 -1.442695, %v598_v40  ;;  %v601_v46 = vadd.f32 %v563_v38, %v348_v41  ;;  %v340_v47 = vadd.f32 %v339_v43, %v202_v16 }
 0x1a5   :  { %v827_v50 = vpop.f32.mrf.mxu1 }
 0x1a6   :  { %880 = vpow2.f32 %v777_v45  ;;  %v780_v52 = vmul.f32 -1.442695, %v601_v46  ;;  %v599_v53 = vadd.f32 %v555_v42, %v340_v47  ;;  %v361_v54 = vadd.f32 %v827_v50, %v227_v21  ;;  %v457_v42 = vpop.permute.xlu1 %456  ;;  %v237_v50 = vpop.permute.xlu0 %236 }
 0x1a7   :  { %v352_v56 = vpop.f32.mrf.mxu1 }
 0x1a8   :  { %882 = vpow2.f32 %v780_v52  ;;  %v778_v57 = vmul.f32 -1.442695, %v599_v53  ;;  %v628_v58 = vadd.f32 %v576_v48, %v361_v54  ;;  %v353_v59 = vadd.f32 %v352_v56, %v217_v32 }
 0x1a9   :  { %v828_v62 = vpop.f32.mrf.mxu1 }
 0x1aa   :  { %884 = vpow2.f32 %v778_v57  ;;  %v783_v63 = vmul.f32 -1.442695, %v628_v58  ;;  %v626_v0 = vadd.f32 %v568_v55, %v353_v59  ;;  %v364_v1 = vadd.f32 %v828_v62, %v232_v23  ;;  %v847_v23 = vpop.f32.mrf.mxu0 }
 0x1ab   :  { %v355_v3 = vpop.f32.mrf.mxu1  ;;  %v592_v39 = vadd.f32 %v847_v23, %v462_v17 }
 0x1ac   :  { %v781_v9 = vmul.f32 -1.442695, %v626_v0  ;;  %v629_v11 = vadd.f32 %v579_v60, %v364_v1  ;;  %v356_v12 = vadd.f32 %v355_v3, %v222_v44  ;;  %886 = vpow2.f32 %v783_v63  ;;  %v583_v29 = vpop.f32.mrf.mxu0  ;;  %v242_v63 = vpop.permute.xlu1 %241 }
 0x1ad   :  { %v831_v28 = vpop.f32.mrf.mxu1  ;;  %v584_v45 = vadd.f32 %v583_v29, %v452_v33 }
 0x1ae   :  { %v784_v13 = vmul.f32 -1.442695, %v629_v11  ;;  %v627_v14 = vadd.f32 %v571_v7, %v356_v12  ;;  %888 = vpow2.f32 %v781_v9  ;;  %v848_v36 = vpop.f32.mrf.mxu0  ;;  %v377_v47 = vadd.f32 %v831_v28, %v247_v26 }
 0x1af   :  { %v368_v34 = vpop.f32.mrf.mxu1  ;;  %v595_v51 = vadd.f32 %v848_v36, %v467_v22 }
 0x1b0   :  { %v782_v15 = vmul.f32 -1.442695, %v627_v14  ;;  %890 = vpow2.f32 %v784_v13  ;;  %v586_v46 = vpop.f32.mrf.mxu0  ;;  %v369_v54 = vadd.f32 %v368_v34, %v237_v50 }
 0x1b1   :  { %v879_v16 = vpop.eup %878  ;;  %v832_v44 = vpop.f32.mrf.mxu1  ;;  %v587_v57 = vadd.f32 %v586_v46, %v457_v42 }
 0x1b2   :  { %v616_v18 = vadd.f32 1.0, %v879_v16  ;;  %892 = vpow2.f32 %v782_v15  ;;  %v380_v60 = vadd.f32 %v832_v44, %v252_v31 }
 0x1b3   :  { %v881_v19 = vpop.eup %880  ;;  %v371_v58 = vpop.f32.mrf.mxu1 }
 0x1b4   :  { %894 = vrcp.f32 %v616_v18  ;;  %v614_v20 = vadd.f32 1.0, %v881_v19  ;;  %v372_v1 = vadd.f32 %v371_v58, %v242_v63 }
 0x1b5   :  { %v883_v21 = vpop.eup %882 }
 0x1b6   :  { %896 = vrcp.f32 %v614_v20  ;;  %v617_v24 = vadd.f32 1.0, %v883_v21 }
 0x1b7   :  { %v885_v25 = vpop.eup %884 }
 0x1b8   :  { %898 = vrcp.f32 %v617_v24  ;;  %v615_v27 = vadd.f32 1.0, %v885_v25 }
 0x1b9   :  { %v887_v30 = vpop.eup %886 }
 0x1ba   :  { %900 = vrcp.f32 %v615_v27  ;;  %v644_v37 = vadd.f32 1.0, %v887_v30 }
 0x1bb   :  { %v889_v32 = vpop.eup %888 }
 0x1bc   :  { %v642_v40 = vadd.f32 1.0, %v889_v32  ;;  %902 = vrcp.f32 %v644_v37  ;;  %v689_v32 = vpop.permute.xlu0 %688 }
 0x1bd   :  { %v891_v35 = vpop.eup %890 }
 0x1be   :  { %v645_v43 = vadd.f32 1.0, %v891_v35  ;;  %904 = vrcp.f32 %v642_v40 }
 0x1bf   :  { %v893_v38 = vpop.eup %892 }
 0x1c0   :  { %v643_v52 = vadd.f32 1.0, %v893_v38  ;;  %906 = vrcp.f32 %v645_v43 }
 0x1c1   :  { %v895_v41 = vpop.eup %894 }
 0x1c2   :  { %v656_v48 = vmul.f32 %v895_v41, %v592_v39 }
 0x1c3   :  { %v897_v49 = vpop.eup %896 }
 0x1c4   :  { %v660_v53 = vadd.f32 %v656_v48, %v377_v47  ;;  %v654_v55 = vmul.f32 %v897_v49, %v584_v45 }
 0x1c5   :  { %v899_v56 = vpop.eup %898 }
 0x1c6   :  { %908 = vtanh.f32 %v660_v53  ;;  %v658_v59 = vadd.f32 %v654_v55, %v369_v54  ;;  %v657_v61 = vmul.f32 %v899_v56, %v595_v51 }
 0x1c7   :  { %v901_v62 = vpop.eup %900  ;;  %910 = vrcp.f32 %v643_v52 }
 0x1c8   :  { %912 = vtanh.f32 %v658_v59  ;;  %v661_v0 = vadd.f32 %v657_v61, %v380_v60  ;;  %v655_v2 = vmul.f32 %v901_v62, %v587_v57 }
 0x1c9   :  { %v903_v7 = vpop.eup %902 }
 0x1ca   :  { %914 = vtanh.f32 %v661_v0  ;;  %v659_v3 = vadd.f32 %v655_v2, %v372_v1  ;;  %v668_v12 = vsub.f32 1.0, %v903_v7  ;;  %v676_v16 = vmul.f32 %v903_v7, %v994_v4 }
 0x1cb   :  { %v905_v9 = vpop.eup %904 }
 0x1cc   :  { %916 = vtanh.f32 %v659_v3  ;;  %v666_v17 = vsub.f32 1.0, %v905_v9  ;;  %v674_v22 = vmul.f32 %v905_v9, %v1004_v6 }
 0x1cd   :  { %v907_v11 = vpop.eup %906 }
 0x1ce   :  { %v669_v19 = vsub.f32 1.0, %v907_v11  ;;  %v677_v25 = vmul.f32 %v907_v11, %v999_v5 }
 0x1d3   :  { %v909_v13 = vpop.eup %908 }
 0x1d4   :  { %v911_v14 = vpop.eup %910  ;;  %v672_v15 = vmul.f32 %v909_v13, %v668_v12 }
 0x1d5   :  { %v913_v18 = vpop.eup %912  ;;  %v667_v26 = vsub.f32 1.0, %v911_v14  ;;  %v675_v30 = vmul.f32 %v911_v14, %v1011_v8  ;;  %v682_v8 = vld [vmem:[%s1190_s8] sm:$0xf] }
 0x1d6   :  { %v680_v20 = vadd.f32 %v676_v16, %v672_v15  ;;  %v670_v21 = vmul.f32 %v913_v18, %v666_v17 }
 0x1d7   :  { %v915_v23 = vpop.eup %914 }
 0x1d8   :  { %v673_v24 = vmul.f32 %v915_v23, %v669_v19  ;;  %737 = vst [vmem:[%s1189_s11 + $0x10] sm:$0xff] %v680_v20  ;;  %v678_v27 = vadd.f32 %v674_v22, %v670_v21 }
 0x1d9   :  { %v917_v28 = vpop.eup %916 }
 0x1da   :  { %v681_v29 = vadd.f32 %v677_v25, %v673_v24  ;;  %v671_v4 = vmul.f32 %v917_v28, %v667_v26  ;;  %735 = vst [vmem:[%s1189_s11] sm:$0xff] %v678_v27 }
 0x1dc   :  { %v684_v6 = vpack.c.bf16 %v681_v29, %v680_v20  ;;  %738 = vst [vmem:[%s1189_s11 + $0x18] sm:$0xff] %v681_v29  ;;  %v679_v5 = vadd.f32 %v675_v30, %v671_v4 }
 0x1de   :  { %850 = vmatpush3.bf16.msra.mxu1 %v684_v6  ;;  %736 = vst [vmem:[%s1189_s11 + $0x8] sm:$0xff] %v679_v5  ;;  %v683_v31 = vpack.c.bf16 %v679_v5, %v678_v27 }
 0x1df   :  { %851 = vmatprep.subr.bf16.mxu1 %v919_v10 }
 0x1e2   :  { %852 = vmatpush3.bf16.msra.mxu1 %v683_v31 }
 0x1e5   :  { %854 = vmatmul.mubr.msk.bf16.vlgmr.msra.gmra.mxu1 %vm108_vm0, %v682_v8 }
 0x2a5   :  { %v728_v33 = vpop.f32.mrf.mxu1 }
 0x2a6   :  { %v729_v34 = vadd.f32 %v728_v33, %v689_v32 }
 0x2a7   :  { %v855_v35 = vpop.f32.mrf.mxu1 }
 0x2a8   :  { %734 = vst [vmem:[%s1191_s10] sm:$0xff] %v729_v34 }
 0x2a9   :  { %v731_v36 = vpop.f32.mrf.mxu1 }
 0x2ab   :  { %v856_v37 = vpop.f32.mrf.mxu1 }

</bundles_post_ra>
